<compile_context>
chip_gen: v7x
topology: tpu7x:2x2x1
jax: 0.10.0
libtpu: 0.0.40
codegen_flags: <defaults>
</compile_context>

<pallas_src>
import jax
import jax.numpy as jnp
from jax.experimental import pallas as pl
from jax.experimental.pallas import tpu as pltpu


def _round_up(x, m):
    return ((x + m - 1) // m) * m


def _vmem_caps():
    """(live-tile budget, vmem_limit ceiling) in bytes, generation aware."""
    try:
        cap = int(pltpu.get_tpu_info().vmem_capacity_bytes)
    except Exception:
        cap = 64 * 1024 * 1024  # conservative: assume the smallest (v7x-sized) VMEM
    budget = min((cap * 3) // 4, 64 * 1024 * 1024)   # double-buffered tile budget
    limit_ceiling = cap - 8 * 1024 * 1024            # headroom under physical VMEM
    return budget, limit_ceiling


def _outconv_kernel(w_ref, b_ref, x_ref, o_ref):
    """1x1 conv on one (batch, spatial-tile) block.

    w_ref: (Cout, Cin) f32, SMEM (scalar-prefetched)
    b_ref: (Cout,)     f32, SMEM (scalar-prefetched)
    x_ref: (Cin,  tr, 128) VMEM  (leading batch dim squeezed by BlockSpec)
    o_ref: (Cout, tr, 128) VMEM
    """
    cin = x_ref.shape[0]
    cout = o_ref.shape[0]

    # Hoist every SMEM scalar read into locals before the compute loops.
    w = [[w_ref[co, ci] for ci in range(cin)] for co in range(cout)]
    b = [b_ref[co] for co in range(cout)]

    # Load each input channel plane once; reuse it across all Cout outputs.
    # (f32 scalar * plane promotes bf16 activations to an f32 accumulator.)
    xs = [x_ref[ci] for ci in range(cin)]

    for co in range(cout):                      # unrolled at trace time (tiny)
        acc = xs[0] * w[co][0] + b[co]
        for ci in range(1, cin):
            acc = acc + xs[ci] * w[co][ci]
        if acc.dtype == o_ref.dtype:
            o_ref[co] = acc
        else:
            o_ref[co] = acc.astype(o_ref.dtype)


def outconv_pallas(x_nchw, weight, bias):
    """nn.Conv2d(in_channels, out_channels, kernel_size=1) forward.

    Args:
      x_nchw: (N, Cin, H, W)  (f32 or bf16)
      weight: (Cout, Cin, 1, 1)   (PyTorch Conv2d weight layout)
      bias:   (Cout,)
    Returns:
      (N, Cout, H, W), same dtype as x.
    """
    N, Cin, H, W = x_nchw.shape
    Cout = weight.shape[0]
    HW = H * W
    lane = 128

    w2d = weight.reshape(Cout, Cin).astype(jnp.float32)
    b1d = bias.reshape(Cout).astype(jnp.float32)

    # --- Lane-dense spatial layout: pad HW up to a multiple of 128. ---
    rows = pl.cdiv(HW, lane)
    pad = rows * lane - HW
    x3 = x_nchw.reshape(N, Cin, HW)
    if pad:
        x3 = jnp.pad(x3, ((0, 0), (0, 0), (0, pad)))
    x4d = x3.reshape(N, Cin, rows, lane)

    itemsize = jnp.dtype(x_nchw.dtype).itemsize

    # --- Generation-aware spatial-row tile sizing (double-buffered in+out). ---
    budget, limit_ceiling = _vmem_caps()
    bytes_per_row_live = 2 * (Cin + Cout) * lane * itemsize   # 2x = double buffer
    tr_cap = max(8, (budget // bytes_per_row_live) // 8 * 8)
    tr_cap = min(tr_cap, 2048)           # soft cap: keep per-step DMA granular

    if rows <= tr_cap:
        tr = rows                        # one full-extent spatial block
    else:
        # Even tiling: avoid a short partial tail block (wasted DMA bandwidth).
        n_tiles = pl.cdiv(rows, tr_cap)
        tr = _round_up(pl.cdiv(rows, n_tiles), 8)

    # v7x megacore: make sure both TensorCores get at least one grid step.
    if N * pl.cdiv(rows, tr) < 2 and rows >= 16:
        tr = _round_up(pl.cdiv(rows, 2), 8)

    grid = (N, pl.cdiv(rows, tr))

    live_bytes = 2 * (Cin + Cout) * tr * lane * itemsize
    vmem_limit = min(limit_ceiling,
                     max(32 * 1024 * 1024, live_bytes + 8 * 1024 * 1024))

    cost = pl.CostEstimate(
        flops=2 * N * HW * Cin * Cout,
        transcendentals=0,
        bytes_accessed=(Cin + Cout) * N * HW * itemsize,
    )

    out4d = pl.pallas_call(
        _outconv_kernel,
        out_shape=jax.ShapeDtypeStruct((N, Cout, rows, lane), x_nchw.dtype),
        grid_spec=pltpu.PrefetchScalarGridSpec(
            num_scalar_prefetch=2,                    # weight + bias -> SMEM
            grid=grid,
            in_specs=[
                pl.BlockSpec((None, Cin, tr, lane),
                             lambda n, s, w, b: (n, 0, s, 0)),
            ],
            out_specs=pl.BlockSpec((None, Cout, tr, lane),
                                   lambda n, s, w, b: (n, 0, s, 0)),
        ),
        compiler_params=pltpu.CompilerParams(
            dimension_semantics=("parallel", "parallel"),
            vmem_limit_bytes=vmem_limit,
        ),
        cost_estimate=cost,
    )(w2d, b1d, x4d)

    out = out4d.reshape(N, Cout, rows * lane)
    if pad:
        out = out[:, :, :HW]
    return out.reshape(N, Cout, H, W)


if __name__ == "__main__":
    # Small shapes consistent with OutConv: batch=2, in_channels=4,
    # spatial=16x16, out_channels=3.
    N, Cin, H, W = 2, 4, 16, 16
    Cout = 3

    key = jax.random.PRNGKey(0)
    kx, kw, kb = jax.random.split(key, 3)

    x = jax.random.normal(kx, (N, Cin, H, W), dtype=jnp.float32)
    weight = jax.random.normal(kw, (Cout, Cin, 1, 1), dtype=jnp.float32) * 0.1
    bias = jax.random.normal(kb, (Cout,), dtype=jnp.float32) * 0.1

    out = outconv_pallas(x, weight, bias)
    out = jax.block_until_ready(out)

    # Reference: pure-JAX 1x1 conv (same math as PyTorch Conv2d with k=1).
    ref = (jnp.einsum("nchw,oc->nohw", x, weight.reshape(Cout, Cin))
           + bias[None, :, None, None])
    assert out.shape == (N, Cout, H, W)
    assert jnp.allclose(out, ref, atol=1e-5, rtol=1e-5)

    # Also exercise a ragged-HW shape (pads to a multiple of 128) to cover the
    # new lane-dense padding path.
    x2 = jax.random.normal(kx, (1, Cin, 10, 13), dtype=jnp.float32)
    out2 = jax.block_until_ready(outconv_pallas(x2, weight, bias))
    ref2 = (jnp.einsum("nchw,oc->nohw", x2, weight.reshape(Cout, Cin))
            + bias[None, :, None, None])
    assert jnp.allclose(out2, ref2, atol=1e-5, rtol=1e-5)

    print("KERNEL_OK")
</pallas_src>

<mosaic_0001>
module attributes {stable_mosaic.version = 11 : i64} {
  func.func @_outconv_kernel(%arg0: i32, %arg1: i32, %arg2: memref<3x4xf32, #tpu.memory_space<smem>>, %arg3: memref<3xf32, #tpu.memory_space<smem>>, %arg4: memref<1x4x2x128xf32, #tpu.memory_space<vmem>>, %arg5: memref<1x3x2x128xf32, #tpu.memory_space<vmem>>) attributes {dimension_semantics = [#tpu.dimension_semantics<parallel>, #tpu.dimension_semantics<parallel>], iteration_bounds = array<i64: 2, 1>, scalar_prefetch = 2 : i64, scratch_operands = 0 : i64, tpu.core_type = #tpu.core_type<tc>, window_params = [{transform_indices = @transform_0, window_bounds = array<i64: 1, 4, 2, 128>}, {transform_indices = @transform_1, window_bounds = array<i64: 1, 3, 2, 128>}]} {
    %c0 = arith.constant 0 : index
    %c0_0 = arith.constant 0 : index
    %0 = memref.load %arg2[%c0, %c0_0] : memref<3x4xf32, #tpu.memory_space<smem>>
    %c0_1 = arith.constant 0 : index
    %c1 = arith.constant 1 : index
    %1 = memref.load %arg2[%c0_1, %c1] : memref<3x4xf32, #tpu.memory_space<smem>>
    %c0_2 = arith.constant 0 : index
    %c2 = arith.constant 2 : index
    %2 = memref.load %arg2[%c0_2, %c2] : memref<3x4xf32, #tpu.memory_space<smem>>
    %c0_3 = arith.constant 0 : index
    %c3 = arith.constant 3 : index
    %3 = memref.load %arg2[%c0_3, %c3] : memref<3x4xf32, #tpu.memory_space<smem>>
    %c1_4 = arith.constant 1 : index
    %c0_5 = arith.constant 0 : index
    %4 = memref.load %arg2[%c1_4, %c0_5] : memref<3x4xf32, #tpu.memory_space<smem>>
    %c1_6 = arith.constant 1 : index
    %c1_7 = arith.constant 1 : index
    %5 = memref.load %arg2[%c1_6, %c1_7] : memref<3x4xf32, #tpu.memory_space<smem>>
    %c1_8 = arith.constant 1 : index
    %c2_9 = arith.constant 2 : index
    %6 = memref.load %arg2[%c1_8, %c2_9] : memref<3x4xf32, #tpu.memory_space<smem>>
    %c1_10 = arith.constant 1 : index
    %c3_11 = arith.constant 3 : index
    %7 = memref.load %arg2[%c1_10, %c3_11] : memref<3x4xf32, #tpu.memory_space<smem>>
    %c2_12 = arith.constant 2 : index
    %c0_13 = arith.constant 0 : index
    %8 = memref.load %arg2[%c2_12, %c0_13] : memref<3x4xf32, #tpu.memory_space<smem>>
    %c2_14 = arith.constant 2 : index
    %c1_15 = arith.constant 1 : index
    %9 = memref.load %arg2[%c2_14, %c1_15] : memref<3x4xf32, #tpu.memory_space<smem>>
    %c2_16 = arith.constant 2 : index
    %c2_17 = arith.constant 2 : index
    %10 = memref.load %arg2[%c2_16, %c2_17] : memref<3x4xf32, #tpu.memory_space<smem>>
    %c2_18 = arith.constant 2 : index
    %c3_19 = arith.constant 3 : index
    %11 = memref.load %arg2[%c2_18, %c3_19] : memref<3x4xf32, #tpu.memory_space<smem>>
    %c0_20 = arith.constant 0 : index
    %12 = memref.load %arg3[%c0_20] : memref<3xf32, #tpu.memory_space<smem>>
    %c1_21 = arith.constant 1 : index
    %13 = memref.load %arg3[%c1_21] : memref<3xf32, #tpu.memory_space<smem>>
    %c2_22 = arith.constant 2 : index
    %14 = memref.load %arg3[%c2_22] : memref<3xf32, #tpu.memory_space<smem>>
    %c0_23 = arith.constant 0 : index
    %c0_24 = arith.constant 0 : index
    %c0_25 = arith.constant 0 : index
    %c0_26 = arith.constant 0 : index
    %15 = vector.load %arg4[%c0_23, %c0_24, %c0_25, %c0_26] : memref<1x4x2x128xf32, #tpu.memory_space<vmem>>, vector<1x1x2x128xf32>
    %16 = vector.shape_cast %15 : vector<1x1x2x128xf32> to vector<2x128xf32>
    %c0_27 = arith.constant 0 : index
    %c1_28 = arith.constant 1 : index
    %c0_29 = arith.constant 0 : index
    %c0_30 = arith.constant 0 : index
    %17 = vector.load %arg4[%c0_27, %c1_28, %c0_29, %c0_30] : memref<1x4x2x128xf32, #tpu.memory_space<vmem>>, vector<1x1x2x128xf32>
    %18 = vector.shape_cast %17 : vector<1x1x2x128xf32> to vector<2x128xf32>
    %c0_31 = arith.constant 0 : index
    %c2_32 = arith.constant 2 : index
    %c0_33 = arith.constant 0 : index
    %c0_34 = arith.constant 0 : index
    %19 = vector.load %arg4[%c0_31, %c2_32, %c0_33, %c0_34] : memref<1x4x2x128xf32, #tpu.memory_space<vmem>>, vector<1x1x2x128xf32>
    %20 = vector.shape_cast %19 : vector<1x1x2x128xf32> to vector<2x128xf32>
    %c0_35 = arith.constant 0 : index
    %c3_36 = arith.constant 3 : index
    %c0_37 = arith.constant 0 : index
    %c0_38 = arith.constant 0 : index
    %21 = vector.load %arg4[%c0_35, %c3_36, %c0_37, %c0_38] : memref<1x4x2x128xf32, #tpu.memory_space<vmem>>, vector<1x1x2x128xf32>
    %22 = vector.shape_cast %21 : vector<1x1x2x128xf32> to vector<2x128xf32>
    %23 = vector.broadcast %0 : f32 to vector<2x128xf32>
    %24 = arith.mulf %16, %23 : vector<2x128xf32>
    %25 = vector.broadcast %12 : f32 to vector<2x128xf32>
    %26 = arith.addf %24, %25 : vector<2x128xf32>
    %27 = vector.broadcast %1 : f32 to vector<2x128xf32>
    %28 = arith.mulf %18, %27 : vector<2x128xf32>
    %29 = arith.addf %26, %28 : vector<2x128xf32>
    %30 = vector.broadcast %2 : f32 to vector<2x128xf32>
    %31 = arith.mulf %20, %30 : vector<2x128xf32>
    %32 = arith.addf %29, %31 : vector<2x128xf32>
    %33 = vector.broadcast %3 : f32 to vector<2x128xf32>
    %34 = arith.mulf %22, %33 : vector<2x128xf32>
    %35 = arith.addf %32, %34 : vector<2x128xf32>
    %c0_39 = arith.constant 0 : index
    %c0_40 = arith.constant 0 : index
    %c0_41 = arith.constant 0 : index
    %c0_42 = arith.constant 0 : index
    %36 = vector.load %arg5[%c0_39, %c0_40, %c0_41, %c0_42] : memref<1x3x2x128xf32, #tpu.memory_space<vmem>>, vector<1x1x2x128xf32>
    %37 = vector.shape_cast %36 : vector<1x1x2x128xf32> to vector<2x128xf32>
    %38 = vector.shape_cast %35 : vector<2x128xf32> to vector<1x1x2x128xf32>
    tpu.vector_store %arg5[%c0_39, %c0_40, %c0_41, %c0_42], %38 {strides = array<i32>} : memref<1x3x2x128xf32, #tpu.memory_space<vmem>>, vector<1x1x2x128xf32>,
    %39 = vector.broadcast %4 : f32 to vector<2x128xf32>
    %40 = arith.mulf %16, %39 : vector<2x128xf32>
    %41 = vector.broadcast %13 : f32 to vector<2x128xf32>
    %42 = arith.addf %40, %41 : vector<2x128xf32>
    %43 = vector.broadcast %5 : f32 to vector<2x128xf32>
    %44 = arith.mulf %18, %43 : vector<2x128xf32>
    %45 = arith.addf %42, %44 : vector<2x128xf32>
    %46 = vector.broadcast %6 : f32 to vector<2x128xf32>
    %47 = arith.mulf %20, %46 : vector<2x128xf32>
    %48 = arith.addf %45, %47 : vector<2x128xf32>
    %49 = vector.broadcast %7 : f32 to vector<2x128xf32>
    %50 = arith.mulf %22, %49 : vector<2x128xf32>
    %51 = arith.addf %48, %50 : vector<2x128xf32>
    %c0_43 = arith.constant 0 : index
    %c1_44 = arith.constant 1 : index
    %c0_45 = arith.constant 0 : index
    %c0_46 = arith.constant 0 : index
    %52 = vector.load %arg5[%c0_43, %c1_44, %c0_45, %c0_46] : memref<1x3x2x128xf32, #tpu.memory_space<vmem>>, vector<1x1x2x128xf32>
    %53 = vector.shape_cast %52 : vector<1x1x2x128xf32> to vector<2x128xf32>
    %54 = vector.shape_cast %51 : vector<2x128xf32> to vector<1x1x2x128xf32>
    tpu.vector_store %arg5[%c0_43, %c1_44, %c0_45, %c0_46], %54 {strides = array<i32>} : memref<1x3x2x128xf32, #tpu.memory_space<vmem>>, vector<1x1x2x128xf32>,
    %55 = vector.broadcast %8 : f32 to vector<2x128xf32>
    %56 = arith.mulf %16, %55 : vector<2x128xf32>
    %57 = vector.broadcast %14 : f32 to vector<2x128xf32>
    %58 = arith.addf %56, %57 : vector<2x128xf32>
    %59 = vector.broadcast %9 : f32 to vector<2x128xf32>
    %60 = arith.mulf %18, %59 : vector<2x128xf32>
    %61 = arith.addf %58, %60 : vector<2x128xf32>
    %62 = vector.broadcast %10 : f32 to vector<2x128xf32>
    %63 = arith.mulf %20, %62 : vector<2x128xf32>
    %64 = arith.addf %61, %63 : vector<2x128xf32>
    %65 = vector.broadcast %11 : f32 to vector<2x128xf32>
    %66 = arith.mulf %22, %65 : vector<2x128xf32>
    %67 = arith.addf %64, %66 : vector<2x128xf32>
    %c0_47 = arith.constant 0 : index
    %c2_48 = arith.constant 2 : index
    %c0_49 = arith.constant 0 : index
    %c0_50 = arith.constant 0 : index
    %68 = vector.load %arg5[%c0_47, %c2_48, %c0_49, %c0_50] : memref<1x3x2x128xf32, #tpu.memory_space<vmem>>, vector<1x1x2x128xf32>
    %69 = vector.shape_cast %68 : vector<1x1x2x128xf32> to vector<2x128xf32>
    %70 = vector.shape_cast %67 : vector<2x128xf32> to vector<1x1x2x128xf32>
    tpu.vector_store %arg5[%c0_47, %c2_48, %c0_49, %c0_50], %70 {strides = array<i32>} : memref<1x3x2x128xf32, #tpu.memory_space<vmem>>, vector<1x1x2x128xf32>,
    return
  }
  func.func @transform_0(%arg0: i32, %arg1: i32, %arg2: memref<3x4xf32, #tpu.memory_space<smem>>, %arg3: memref<3xf32, #tpu.memory_space<smem>>) -> (i32, i32, i32, i32) {
    %c0_i32 = arith.constant 0 : i32
    %c0_i32_0 = arith.constant 0 : i32
    %c0_i32_1 = arith.constant 0 : i32
    return %arg0, %c0_i32, %arg1, %c0_i32_0 : i32, i32, i32, i32
  }
  func.func @transform_1(%arg0: i32, %arg1: i32, %arg2: memref<3x4xf32, #tpu.memory_space<smem>>, %arg3: memref<3xf32, #tpu.memory_space<smem>>) -> (i32, i32, i32, i32) {
    %c0_i32 = arith.constant 0 : i32
    %c0_i32_0 = arith.constant 0 : i32
    %c0_i32_1 = arith.constant 0 : i32
    return %arg0, %c0_i32, %arg1, %c0_i32_0 : i32, i32, i32, i32
  }
}

</mosaic_0001>

<bundles_post_ra>
// kernel: tpu_custom_call.1
= control target key start
LH: loop header
LB: loop body
LE: loop exit
PB: predicated region body
PF: predicated region fallthrough
CT: control target
= control target key end

     0   :  { %s795_s0 = inlined_call_operand.hbm [shape: f32[3,4], index: 0, kind: input, shape index: {}]   ;;  %s796_s2 = inlined_call_operand.hbm [shape: f32[2,4,2,128], index: 2, kind: input, shape index: {}]   ;;  %s797_s3 = inlined_call_operand.hbm [shape: f32[2,3,2,128], index: 3, kind: output, shape index: {}]   ;;  %s798_s1 = inlined_call_operand.vmem [shape: f32[3], index: 1, kind: input, shape index: {}]  }
   0x1   :  { %s429_s14 = scalar_lea.hbm %s795_s0, 64 }
   0x2   :  { %p430_p0 = scmp.ne.s32.totalorder %s795_s0, %s429_s14  ;;  %p433_p1 = scmp.lt.u32.totalorder %s429_s14, %s795_s0 }
   0x4   :  { %p435_p2 = pnand %p433_p1, %p430_p0 }
   0x6   :  { %438 = shalt.err (!%p435_p2)  }
   0x7   :  { %s567_s19 = smov [#allocation3]   ;;  %s10_s24 = sshll.u32 %s798_s1, 4  ;;  %s11_s24 = int_to_ptr.vmem [resolvable:$true] %s10_s24 }
   0x8   :  { %9 = dma.hbm_to_smem %s795_s0, 64, %s567_s19, [#allocation2] }
   0x9   :  { %s439_s25 = scalar_lea.vmem %s11_s24, 16  ;;  %p444_p4 = scmp.lt.s32.totalorder %s11_s24, %s11_s24 }
   0xa   :  { %p440_p3 = scmp.ne.s32.totalorder %s11_s24, %s439_s25  ;;  %p445_p5 = scmp.lt.s32.totalorder %s439_s25, %s439_s25 }
   0xc   :  { %p446_p6 = por %p445_p5, %p444_p4 }
   0xe   :  { %p447_p7 = pnand %p446_p6, %p440_p3 }
  0x10   :  { %450 = shalt.err (!%p447_p7)  }
  0x11   :  { %s568_s26 = smov [#allocation4]  }
  0x12   :  { %13 = dma.vmem_to_smem %s11_s24, 16, %s568_s26, [#allocation2] }
  0x13   :  { %533 = dma.done.wait [#allocation2], 80 }
  0x14   :  { %534 = vsyncadd [#allocation2], 4294967216 }
  0x15   :  { %15 = sfence }
  0x16   :  { %16 = vsyncpa [#allocation6], 0 }
  0x17   :  { %18 = vsyncpa [#allocation6 + $0x1], 0 }
  0x18   :  { %19 = vsyncpa [#allocation7], 0 }
  0x19   :  { %21 = vsyncpa [#allocation7 + $0x1], 0  ;;  %s610_s0 = smov 0   ;;  %s612_s1 = smov 0  }
  0x1a   :  { %s614_s27 = smov 0   ;;  %s616_s28 = smov 0  }
  0x1b   :  { %s618_s29 = smov 0   ;;  %s620_s30 = smov 0  }
  0x1c LB: > { %s328_s4 = sadd.s32 4294967295, %s565_s30   ;;  %s329_s5 = sadd.s32 4294967294, %s565_s30   ;;  %s565_s30 = sphi %s620_s30, %s27_s30   ;;  %s561_s29 = sphi %s618_s29, %s813_s29   ;;  %s557_s28 = sphi %s616_s28, %s812_s28   ;;  %s553_s27 = sphi %s614_s27, %s811_s27   ;;  %s549_s1 = sphi %s612_s1, %s810_s1   ;;  %s545_s0 = sphi %s610_s0, %s809_s0  }
  0x1d   : > { %s39_s6 = sadd.s32 1, %s561_s29  ;;  %s48_s7 = sadd.s32 1, %s553_s27 }
  0x1e   : > { %p41_p8 = scmp.ge.s32.totalorder %s39_s6, 2  ;;  %p55_p9 = scmp.ne.s32.totalorder %s553_s27, %s549_s1 }
  0x1f   : > { %p56_p10 = scmp.eq.s32.totalorder %s565_s30, 0  ;;  %p61_p11 = scmp.ne.s32.totalorder %s549_s1, %s545_s0 }
  0x20   : > { %s815_s6 = smov (%p41_p8, %s39_s6), 0  ;;  %p62_p13 = scmp.eq.s32.totalorder %s328_s4, 0 }
  0x21   : > { %p651_p12 = por %p56_p10, %p55_p9  ;;  %s43_s9 = ssub.s32 %s561_s29, %s815_s6 }
  0x22   : > { %p87_p0 = scmp.eq.s32.totalorder %s328_s4, 1  ;;  %p46_p1 = scmp.eq.s32.totalorder %s43_s9, 0 }
  0x23   : > { %p657_p2 = por %p62_p13, %p61_p11  ;;  %p93_p4 = scmp.eq.s32.totalorder %s329_s5, 1 }
  0x24   : > { %p661_p3 = por %p87_p0, %p55_p9  ;;  %p373_p7 = scmp.lt.s32.totalorder %s565_s30, 2 }
  0x25   : > { %s666_s12 = scalar_select %p46_p1, %s553_s27, %s48_s7  }
  0x26   : > { %s802_s11 = scalar_select %p661_p3, 1, 0 }
  0x27   : > { %p668_p5 = por %p93_p4, %p61_p11  ;;  %s113_s14 = sand.u32 1, %s553_s27  }
  0x28   : > { %s332_s15 = sshll.u32 %s113_s14, 3  ;;  %s358_s16 = sshll.u32 %s561_s29, 7 }
  0x29   : > { %s803_s13 = scalar_select %p668_p5, 1, 0 }
  0x2a   : > { %s679_s19 = scalar_lea.hbm %s796_s2, %s358_s16  ;;  %s117_s20 = scalar_lea.vmem [#allocation5], %s332_s15 }
  0x2b   : > { %s125_s21 = sshll.u32 %s117_s20, 4  ;;  %p685_p8 = pnand %p373_p7, %p651_p12  ;;  %s681_s21 = int_to_ptr.vmem [resolvable:$true] %s125_s21 }
  0x2c   : > { %s690_s23 = scalar_lea.sflag [#allocation6], %s113_s14  ;;  %s451_s24 = scalar_lea.hbm %s679_s19, 128 }
  0x2d   : > { %p452_p10 = scmp.ne.s32.totalorder %s679_s19, %s451_s24  ;;  %p453_p11 = pneg %p685_p8 }
  0x2e   : > { %s456_s4 = scalar_lea.hbm %s796_s2, 256  ;;  %p457_p12 = scmp.lt.u32.totalorder %s679_s19, %s796_s2 }
  0x2f   : > { %p454_p13 = pnand %p453_p11, %p452_p10  ;;  %p458_p1 = scmp.lt.u32.totalorder %s456_s4, %s451_s24 }
  0x30   : > { %p460_p7 = scmp.lt.u32.totalorder %s451_s24, %s679_s19 }
  0x31   : > { %p455_p0 = pneg %p454_p13  ;;  %p459_p4 = por %p458_p1, %p457_p12 }
  0x33   : > { %p461_p6 = por %p460_p7, %p459_p4 }
  0x35   : > { %p462_p9 = pnand %p461_p6, %p455_p0 }
  0x37   : > { %465 = shalt.err (!%p462_p9)
}
  0x38   : > { %s466_s8 = scalar_lea.vmem %s681_s21, 128  ;;  %s569_s9 = smov [#allocation5]  }
  0x39   : > { %p467_p10 = scmp.ne.s32.totalorder %s681_s21, %s466_s8  ;;  %s471_s14 = sshll.u32 %s569_s9, 4  ;;  %s472_s14 = int_to_ptr.vmem [resolvable:$false] %s471_s14 }
  0x3a   : > { %s473_s15 = scalar_lea.vmem %s472_s14, 256  ;;  %p474_p3 = scmp.lt.s32.totalorder %s681_s21, %s472_s14 }
  0x3b   : > { %p469_p13 = pnand %p467_p10, %p453_p11  ;;  %p475_p12 = scmp.lt.s32.totalorder %s473_s15, %s466_s8 }
  0x3d   : > { %p470_p5 = pneg %p469_p13  ;;  %p476_p1 = por %p475_p12, %p474_p3 }
  0x3f   : > { %p477_p4 = pnand %p476_p1, %p470_p5 }
  0x41   : > { %480 = shalt.err (!%p477_p4)
}
  0x42   : > { %s570_s16 = smov 32   ;;  %s571_s17 = smov 2  }
  0x43   : > { %368 = dma.hbm_to_vmem [thread:$0]  (!%p685_p8), %s679_s19, 128, %s681_s21, %s690_s23, %s570_s16, %s570_s16, %s571_s17  }
  0x44   : > { %p133_p6 = scmp.lt.s32.totalorder %s565_s30, 3  ;;  %p805_p9 = scmp.ge.s32.totalorder %s565_s30, 1 }
  0x46   : > { %p134_p11 = pnand %p805_p9, %p133_p6 }
  0x47   : > { %s722_s18 = sand.u32 (!%p134_p11), 1, %s549_s1  }
  0x48   : > { %137 = sbr.rel (%p134_p11) target bundleno = 117 (0x75), region = 24  ;;  %s336_s20 = sshll.u32 (!%p134_p11), %s722_s18, 3 }
  0x49   : > { %s140_s24 = scalar_lea.sflag (!%p134_p11), [#allocation6], %s722_s18  ;;  %s143_s25 = scalar_lea.vmem (!%p134_p11), [#allocation5], %s336_s20 }
  0x4f   : > { %536 = dma.done.wait (%p657_p2), %s140_s24, 128  }
  0x50   : > { %538 = vsyncadd (%p657_p2), %s140_s24, 4294967168  ;;  %s162_s22 = sld [smem:[#allocation3]]  ;;  %s337_s19 = sld [smem:[#allocation3 + $0x1]]  ;;  %v177_v0 = vld [vmem:[%s143_s25] sm:$0x3] }
  0x51   : > { %s338_s21 = sld [smem:[#allocation3 + $0x2]]  ;;  %s339_s23 = sld [smem:[#allocation3 + $0x3]]  ;;  %v350_v1 = vld [vmem:[%s143_s25 + $0x2] sm:$0x3]  ;;  %v351_v2 = vld [vmem:[%s143_s25 + $0x4] sm:$0x3] }
  0x52   : > { %s174_s26 = sld [smem:[#allocation4]]  ;;  %s341_s5 = sld [smem:[#allocation3 + $0x81]]  ;;  %v352_v7 = vld [vmem:[%s143_s25 + $0x6] sm:$0x3] }
  0x53   : > { %s340_s4 = sld [smem:[#allocation3 + $0x80]]  ;;  %s730_s7 = sld [smem:[#allocation3 + $0x82]] }
  0x54   : > { %s732_s8 = sld [smem:[#allocation3 + $0x83]]  ;;  %s348_s10 = sld [smem:[#allocation4 + $0x1]] }
  0x55   : > { %s344_s9 = sld [smem:[#allocation3 + $0x100]]  ;;  %s345_s14 = sld [smem:[#allocation3 + $0x101]] }
  0x56   : > { %v184_v3 = vstv %s162_s22  ;;  %v188_v5 = vstv %s337_s19  ;;  %s346_s15 = sld [smem:[#allocation3 + $0x102]]  ;;  %s734_s16 = sld [smem:[#allocation3 + $0x103]] }
  0x57   : > { %v185_v4 = vmul.f32 %v184_v3, %v177_v0  ;;  %v191_v6 = vstv %s338_s21  ;;  %v189_v9 = vmul.f32 %v350_v1, %v188_v5  ;;  %v194_v10 = vstv %s339_s23  ;;  %s349_s17 = sld [smem:[#allocation4 + $0x2]]  ;;  %s359_s20 = smul.u32 6, %s722_s18 }
  0x58   : > { %v186_v8 = vstv %s174_s26  ;;  %v192_v12 = vmul.f32 %v351_v2, %v191_v6  ;;  %v202_v15 = vstv %s341_s5  ;;  %v195_v17 = vmul.f32 %v352_v7, %v194_v10  ;;  %s360_s22 = smul.u32 96, %s557_s28  ;;  %s229_s26 = scalar_lea.sflag [#allocation7], %s722_s18 }
  0x59   : > { %v187_v11 = vadd.f32 %v186_v8, %v185_v4  ;;  %v198_v13 = vstv %s340_s4  ;;  %v205_v18 = vstv %s730_s7  ;;  %v203_v19 = vmul.f32 %v350_v1, %v202_v15  ;;  %s161_s24 = scalar_lea.vmem [#allocation8], %s359_s20  ;;  %p806_p3 = scmp.ne.s32.totalorder %s802_s11, 0 }
  0x5a   : > { %v199_v14 = vmul.f32 %v198_v13, %v177_v0  ;;  %v208_v20 = vstv %s732_s8  ;;  %v200_v22 = vstv %s348_s10  ;;  %v206_v23 = vmul.f32 %v351_v2, %v205_v18  ;;  %s243_s25 = sshll.u32 %s161_s24, 4  ;;  %s746_s23 = scalar_lea.hbm %s797_s3, %s360_s22  ;;  %s741_s25 = int_to_ptr.vmem [resolvable:$true] %s243_s25 }
  0x5b   : > { %v190_v16 = vadd.f32 %v189_v9, %v187_v11  ;;  %v213_v24 = vstv %s344_s9  ;;  %v217_v27 = vstv %s345_s14  ;;  %v209_v30 = vmul.f32 %v352_v7, %v208_v20  ;;  %s481_s4 = scalar_lea.vmem %s741_s25, 96  ;;  %s572_s28 = smov [#allocation8]  }
  0x5c   : > { %v201_v25 = vadd.f32 %v200_v22, %v199_v14  ;;  %v214_v26 = vmul.f32 %v213_v24, %v177_v0  ;;  %v220_v28 = vstv %s346_s15  ;;  %v218_v32 = vmul.f32 %v350_v1, %v217_v27  ;;  %p482_p2 = scmp.ne.s32.totalorder %s741_s25, %s481_s4  ;;  %s485_s5 = sshll.u32 %s572_s28, 4  ;;  %s486_s5 = int_to_ptr.vmem [resolvable:$false] %s485_s5 }
  0x5d   : > { %v193_v21 = vadd.f32 %v192_v12, %v190_v16  ;;  %v215_v31 = vstv %s349_s17  ;;  %v221_v35 = vmul.f32 %v351_v2, %v220_v28  ;;  %v223_v36 = vstv %s734_s16  ;;  %s487_s7 = scalar_lea.vmem %s486_s5, 192  ;;  %p488_p0 = scmp.lt.s32.totalorder %s741_s25, %s486_s5 }
  0x5e   : > { %v204_v33 = vadd.f32 %v203_v19, %v201_v25  ;;  %v216_v34 = vadd.f32 %v215_v31, %v214_v26  ;;  %v224_v39 = vmul.f32 %v352_v7, %v223_v36  ;;  %p483_p5 = pnand %p482_p2, %p806_p3  ;;  %p489_p7 = scmp.lt.s32.totalorder %s487_s7, %s481_s4 }
  0x5f   : > { %v196_v29 = vadd.f32 %v195_v17, %v193_v21 }
  0x60   : > { %v207_v37 = vadd.f32 %v206_v23, %v204_v33  ;;  %v219_v38 = vadd.f32 %v218_v32, %v216_v34  ;;  %p484_p8 = pneg %p483_p5  ;;  %p490_p10 = por %p489_p7, %p488_p0 }
  0x61   : > { %197 = vst [vmem:[%s161_s24] sm:$0x3] %v196_v29 }
  0x62   : > { %v210_v40 = vadd.f32 %v209_v30, %v207_v37  ;;  %v222_v41 = vadd.f32 %v221_v35, %v219_v38  ;;  %p491_p13 = pnand %p490_p10, %p484_p8 }
  0x64   : > { %353 = vst [vmem:[%s161_s24 + $0x2] sm:$0x3] %v210_v40  ;;  %v225_v42 = vadd.f32 %v224_v39, %v222_v41 }
  0x66   : > { %354 = vst [vmem:[%s161_s24 + $0x4] sm:$0x3] %v225_v42 }
  0x67   : > { %494 = shalt.err (!%p491_p13)
}
  0x68   : > { %s495_s8 = scalar_lea.hbm %s746_s23, 96  ;;  %s499_s14 = scalar_lea.hbm %s797_s3, 192 }
  0x69   : > { %p496_p12 = scmp.ne.s32.totalorder %s746_s23, %s495_s8  ;;  %p500_p6 = scmp.lt.u32.totalorder %s746_s23, %s797_s3 }
  0x6a   : > { %p501_p9 = scmp.lt.u32.totalorder %s499_s14, %s495_s8  ;;  %p503_p2 = scmp.lt.u32.totalorder %s495_s8, %s746_s23 }
  0x6b   : > { %p497_p1 = pnand %p496_p12, %p806_p3 }
  0x6c   : > { %p502_p11 = por %p501_p9, %p500_p6 }
  0x6d   : > { %p498_p4 = pneg %p497_p1 }
  0x6e   : > { %p504_p5 = por %p503_p2, %p502_p11 }
  0x70   : > { %p505_p8 = pnand %p504_p5, %p498_p4 }
  0x72   : > { %508 = shalt.err (!%p505_p8)
}
  0x73   : > { %s573_s17 = smov 32   ;;  %s574_s20 = smov 2  }
  0x74   : > { %363 = dma.vmem_to_hbm [thread:$0]  (%p806_p3), %s741_s25, 96, %s746_s23, %s229_s26, %s573_s17, %s573_s17, %s574_s20  }
  0x75 PF: > { %s258_s24 = sand.u32 1, %s545_s0   ;;  %p807_p0 = scmp.ne.s32.totalorder %s803_s13, 0 }
  0x76   : > { %p808_p7 = scmp.ge.s32.totalorder %s565_s30, 2  ;;  %s259_s22 = scalar_lea.sflag [#allocation7], %s258_s24 }
  0x78   : > { %p370_p10 = pnand %p808_p7, %p807_p0 }
  0x7a   : > { %540 = dma.done.wait (!%p370_p10), %s259_s22, 96  }
  0x7b   : > { %542 = vsyncadd (!%p370_p10), %s259_s22, 4294967200  ;;  %s27_s30 = sadd.s32 1, %s565_s30   ;;  %s809_s0 = smov %s549_s1 }
  0x7c   : > { %p24_p13 = scmp.ge.s32.totalorder %s27_s30, 4   ;;  %s810_s1 = smov %s553_s27 }
  0x7d   : > { %s811_s27 = smov %s666_s12  ;;  %s812_s28 = smov %s561_s29 }
  0x7e   : > { %s813_s29 = smov %s815_s6  ;;  %26 = sbr.rel (!%p24_p13) target bundleno = 28 (0x1c), region = 74 }
  0x85   :  { %264 = vsyncpa [#allocation6], 1 }
  0x86   :  { %266 = vsyncpa [#allocation6 + $0x1], 1 }
  0x87   :  { %267 = vsyncpa [#allocation7], 1 }
  0x88   :  { %269 = vsyncpa [#allocation7 + $0x1], 1 }

</bundles_post_ra>
